<compile_context>
chip_gen: v7x
topology: tpu7x:2x2x1
jax: 0.10.0
libtpu: 0.0.40
codegen_flags: <defaults>
</compile_context>

<pallas_src>
import functools

import jax
import jax.numpy as jnp
import numpy as np
from jax.experimental import pallas as pl
from jax.experimental.pallas import tpu as pltpu


def _round_up(x, m):
    return (x + m - 1) // m * m


def _cdiv(a, b):
    return (a + b - 1) // b


def _value_kernel(x_ref, w1_ref, b1_ref, w2_ref, b2_ref, wv_ref, bv_ref, v_ref):
    wdtype = w1_ref.dtype
    # In-kernel cast of the activation tile (keeps the HBM read in the input's
    # native dtype; the VPU cast hides under MXU time).
    x = x_ref[...].astype(wdtype)

    # hidden1 + relu : MXU matmul, f32 accumulation, f32 elementwise.
    h1 = jnp.dot(x, w1_ref[...], preferred_element_type=jnp.float32) + b1_ref[...]
    h1 = jnp.maximum(h1, 0.0)

    # hidden2 + relu : the dominant (tb, H) x (H, H) GEMM.
    h2 = jnp.dot(h1.astype(wdtype), w2_ref[...],
                 preferred_element_type=jnp.float32) + b2_ref[...]
    h2 = jnp.maximum(h2, 0.0)

    # Value head (out_features == 1) on the VPU + XLU instead of the MXU:
    # wv is passed as a (1, H) f32 row; multiply + lane-reduce + bias.
    v = jnp.sum(h2 * wv_ref[...], axis=-1, keepdims=True) + bv_ref[...]
    v_ref[...] = v.astype(v_ref.dtype)


@functools.partial(jax.jit, static_argnames=("block_b",))
def value_forward(states, params, block_b=1024):
    """ValueNetwork.forward: returns state values of shape [B, 1]."""
    B, n_states = states.shape
    H = params["w1"].shape[1]
    wdtype = params["w1"].dtype

    # Dtype-aware batch-tile rounding: 8 rows (f32), 16 (bf16), 32 (int8/fp8).
    itemsize = min(jnp.dtype(states.dtype).itemsize, jnp.dtype(wdtype).itemsize)
    row_mult = max(8, 32 // int(itemsize))

    # Pick the number of grid steps: honor the block_b cap, and use >= 2 steps
    # whenever the batch allows so v7x's two TensorCores both get work.
    block_b = max(int(block_b), row_mult)
    n_tiles = max(_cdiv(B, block_b), 2 if B >= 2 * row_mult else 1)
    tb = _round_up(_cdiv(B, n_tiles), row_mult)
    Bp = n_tiles * tb
    if Bp != B:
        # Zero rows are numerically inert and sliced off at the end.
        states = jnp.pad(states, ((0, Bp - B), (0, 0)))

    # Head weight as a (1, H) f32 row (used on the VPU); biases in f32.
    wv_row = params["wv"].reshape(1, H).astype(jnp.float32)
    b1 = params["b1"].reshape(1, H).astype(jnp.float32)
    b2 = params["b2"].reshape(1, H).astype(jnp.float32)
    bv = params["bv"].reshape(1, 1).astype(jnp.float32)

    def batch_spec(shape):
        return pl.BlockSpec(shape, lambda i: (i, 0))

    def resident(shape):
        return pl.BlockSpec(shape, lambda i: (0, 0))

    flops = 2 * Bp * (n_states * H + H * H + H)
    bytes_accessed = (
        states.size * states.dtype.itemsize
        + params["w1"].size * params["w1"].dtype.itemsize
        + params["w2"].size * params["w2"].dtype.itemsize
        + (wv_row.size + b1.size + b2.size + bv.size) * 4
        + Bp * 4)

    out = pl.pallas_call(
        _value_kernel,
        out_shape=jax.ShapeDtypeStruct((Bp, 1), jnp.float32),
        grid=(n_tiles,),
        in_specs=[
            batch_spec((tb, n_states)),   # states tile (pipelined over grid)
            resident((n_states, H)),      # W1  (VMEM-resident)
            resident((1, H)),             # b1
            resident((H, H)),             # W2
            resident((1, H)),             # b2
            resident((1, H)),             # Wv (row, f32, VPU-side)
            resident((1, 1)),             # bv
        ],
        out_specs=batch_spec((tb, 1)),
        compiler_params=pltpu.CompilerParams(
            dimension_semantics=("parallel",),
        ),
        cost_estimate=pl.CostEstimate(
            flops=flops, transcendentals=0, bytes_accessed=bytes_accessed),
    )(states, params["w1"], b1, params["w2"], b2, wv_row, bv)

    return out[:B]


def init_params(key, n_states, n_hidden, dtype=jnp.float32):
    """Matches the PyTorch __init__: hidden layers kaiming-normal
    (std = sqrt(2 / fan_in)), value head xavier-uniform, biases zero.
    Hidden-layer weights are stored [in, out] in `dtype` (bf16 feeds the MXU
    natively); head weight and biases stay f32 (VPU-side math)."""
    k1, k2, k3 = jax.random.split(key, 3)

    def he_normal(k, fan_in, fan_out):
        return (jax.random.normal(k, (fan_in, fan_out), jnp.float32)
                * jnp.sqrt(2.0 / fan_in)).astype(dtype)

    def xavier_uniform(k, fan_in, fan_out):
        limit = jnp.sqrt(6.0 / (fan_in + fan_out))
        return jax.random.uniform(
            k, (fan_in, fan_out), jnp.float32, -limit, limit)

    return {
        "w1": he_normal(k1, n_states, n_hidden),
        "b1": jnp.zeros((1, n_hidden), jnp.float32),
        "w2": he_normal(k2, n_hidden, n_hidden),
        "b2": jnp.zeros((1, n_hidden), jnp.float32),
        "wv": xavier_uniform(k3, n_hidden, 1),          # f32
        "bv": jnp.zeros((1, 1), jnp.float32),
    }


def _reference(states, p):
    """Pure-JAX reference with the same precision policy as the kernel."""
    wdtype = p["w1"].dtype
    x = states.astype(wdtype)
    h1 = jnp.maximum(
        jnp.dot(x, p["w1"], preferred_element_type=jnp.float32) + p["b1"], 0.0)
    h2 = jnp.maximum(
        jnp.dot(h1.astype(wdtype), p["w2"],
                preferred_element_type=jnp.float32) + p["b2"], 0.0)
    return h2 @ p["wv"].astype(jnp.float32) + p["bv"]


if __name__ == "__main__":
    # Small shapes consistent with the module (n_hidden_filters defaults to 256).
    B, n_states, n_hidden = 16, 11, 256

    key = jax.random.PRNGKey(0)
    kx, kp = jax.random.split(key)
    states = jax.random.normal(kx, (B, n_states), jnp.float32)

    # ---- f32 weights: tight tolerance; block_b=8 -> 2 grid steps (pipelined).
    p32 = init_params(kp, n_states, n_hidden, dtype=jnp.float32)
    v32 = value_forward(states, p32, block_b=8)
    jax.block_until_ready(v32)
    np.testing.assert_allclose(np.asarray(v32), np.asarray(_reference(states, p32)),
                               rtol=1e-4, atol=1e-4)
    assert v32.shape == (B, 1)

    # ---- bf16 weights (MXU-native inputs), f32 accumulation: looser tolerance.
    p16 = init_params(kp, n_states, n_hidden, dtype=jnp.bfloat16)
    v16 = value_forward(states, p16)
    jax.block_until_ready(v16)
    np.testing.assert_allclose(np.asarray(v16), np.asarray(_reference(states, p16)),
                               rtol=2e-2, atol=2e-2)
    assert v16.shape == (B, 1)

    print("KERNEL_OK")
</pallas_src>

<mosaic_0001>
module attributes {stable_mosaic.version = 11 : i64} {
  func.func @_value_kernel(%arg0: i32, %arg1: memref<8x11xf32, #tpu.memory_space<vmem>>, %arg2: memref<11x256xf32, #tpu.memory_space<vmem>>, %arg3: memref<1x256xf32, #tpu.memory_space<vmem>>, %arg4: memref<256x256xf32, #tpu.memory_space<vmem>>, %arg5: memref<1x256xf32, #tpu.memory_space<vmem>>, %arg6: memref<1x256xf32, #tpu.memory_space<vmem>>, %arg7: memref<1x1xf32, #tpu.memory_space<vmem>>, %arg8: memref<8x1xf32, #tpu.memory_space<vmem>>) attributes {dimension_semantics = [#tpu.dimension_semantics<parallel>], iteration_bounds = array<i64: 2>, scalar_prefetch = 0 : i64, scratch_operands = 0 : i64, tpu.core_type = #tpu.core_type<tc>, window_params = [{transform_indices = @transform_0, window_bounds = array<i64: 8, 11>}, {pipeline_mode = #tpu.pipeline_mode<synchronous>, transform_indices = @transform_1, window_bounds = array<i64: 11, 256>}, {pipeline_mode = #tpu.pipeline_mode<synchronous>, transform_indices = @transform_2, window_bounds = array<i64: 1, 256>}, {pipeline_mode = #tpu.pipeline_mode<synchronous>, transform_indices = @transform_3, window_bounds = array<i64: 256, 256>}, {pipeline_mode = #tpu.pipeline_mode<synchronous>, transform_indices = @transform_4, window_bounds = array<i64: 1, 256>}, {pipeline_mode = #tpu.pipeline_mode<synchronous>, transform_indices = @transform_5, window_bounds = array<i64: 1, 256>}, {pipeline_mode = #tpu.pipeline_mode<synchronous>, transform_indices = @transform_6, window_bounds = array<i64: 1, 1>}, {transform_indices = @transform_7, window_bounds = array<i64: 8, 1>}]} {
    %c0 = arith.constant 0 : index
    %c0_0 = arith.constant 0 : index
    %0 = vector.load %arg1[%c0, %c0_0] : memref<8x11xf32, #tpu.memory_space<vmem>>, vector<8x11xf32>
    %c0_1 = arith.constant 0 : index
    %c0_2 = arith.constant 0 : index
    %1 = vector.load %arg2[%c0_1, %c0_2] : memref<11x256xf32, #tpu.memory_space<vmem>>, vector<11x256xf32>
    %cst = arith.constant dense<0.000000e+00> : vector<8x256xf32>
    %2 = tpu.matmul %0, %1, %cst {dimension_numbers = #tpu.dot_dimension_numbers<[1], [0], [0], [1], [0, 0, 1, 1], [], []>} : vector<8x11xf32>, vector<11x256xf32>, vector<8x256xf32> -> vector<8x256xf32>
    %c0_3 = arith.constant 0 : index
    %c0_4 = arith.constant 0 : index
    %3 = vector.load %arg3[%c0_3, %c0_4] : memref<1x256xf32, #tpu.memory_space<vmem>>, vector<1x256xf32>
    %4 = vector.broadcast %3 : vector<1x256xf32> to vector<8x256xf32>
    %5 = arith.addf %2, %4 : vector<8x256xf32>
    %cst_5 = arith.constant 0.000000e+00 : f32
    %6 = vector.broadcast %cst_5 : f32 to vector<8x256xf32>
    %7 = arith.maximumf %5, %6 : vector<8x256xf32>
    %c0_6 = arith.constant 0 : index
    %c0_7 = arith.constant 0 : index
    %8 = vector.load %arg4[%c0_6, %c0_7] : memref<256x256xf32, #tpu.memory_space<vmem>>, vector<256x256xf32>
    %cst_8 = arith.constant dense<0.000000e+00> : vector<8x256xf32>
    %9 = tpu.matmul %7, %8, %cst_8 {dimension_numbers = #tpu.dot_dimension_numbers<[1], [0], [0], [1], [0, 0, 1, 1], [], []>} : vector<8x256xf32>, vector<256x256xf32>, vector<8x256xf32> -> vector<8x256xf32>
    %c0_9 = arith.constant 0 : index
    %c0_10 = arith.constant 0 : index
    %10 = vector.load %arg5[%c0_9, %c0_10] : memref<1x256xf32, #tpu.memory_space<vmem>>, vector<1x256xf32>
    %11 = vector.broadcast %10 : vector<1x256xf32> to vector<8x256xf32>
    %12 = arith.addf %9, %11 : vector<8x256xf32>
    %cst_11 = arith.constant 0.000000e+00 : f32
    %13 = vector.broadcast %cst_11 : f32 to vector<8x256xf32>
    %14 = arith.maximumf %12, %13 : vector<8x256xf32>
    %c0_12 = arith.constant 0 : index
    %c0_13 = arith.constant 0 : index
    %15 = vector.load %arg6[%c0_12, %c0_13] : memref<1x256xf32, #tpu.memory_space<vmem>>, vector<1x256xf32>
    %16 = vector.broadcast %15 : vector<1x256xf32> to vector<8x256xf32>
    %17 = arith.mulf %14, %16 : vector<8x256xf32>
    %cst_14 = arith.constant dense<0.000000e+00> : vector<8xf32>
    %18 = vector.multi_reduction <add>, %17, %cst_14 [1] : vector<8x256xf32> to vector<8xf32>
    %19 = vector.shape_cast %18 : vector<8xf32> to vector<8x1xf32>
    %c0_15 = arith.constant 0 : index
    %c0_16 = arith.constant 0 : index
    %20 = vector.load %arg7[%c0_15, %c0_16] : memref<1x1xf32, #tpu.memory_space<vmem>>, vector<1x1xf32>
    %21 = vector.broadcast %20 : vector<1x1xf32> to vector<8x1xf32>
    %22 = arith.addf %19, %21 : vector<8x1xf32>
    %c0_17 = arith.constant 0 : index
    %c0_18 = arith.constant 0 : index
    %23 = vector.load %arg8[%c0_17, %c0_18] : memref<8x1xf32, #tpu.memory_space<vmem>>, vector<8x1xf32>
    tpu.vector_store %arg8[%c0_17, %c0_18], %22 {strides = array<i32>} : memref<8x1xf32, #tpu.memory_space<vmem>>, vector<8x1xf32>,
    return
  }
  func.func @transform_0(%arg0: i32) -> (i32, i32) {
    %c0_i32 = arith.constant 0 : i32
    %c0_i32_0 = arith.constant 0 : i32
    return %arg0, %c0_i32 : i32, i32
  }
  func.func @transform_1(%arg0: i32) -> (i32, i32) {
    %c0_i32 = arith.constant 0 : i32
    %c0_i32_0 = arith.constant 0 : i32
    %c0_i32_1 = arith.constant 0 : i32
    return %c0_i32, %c0_i32_0 : i32, i32
  }
  func.func @transform_2(%arg0: i32) -> (i32, i32) {
    %c0_i32 = arith.constant 0 : i32
    %c0_i32_0 = arith.constant 0 : i32
    %c0_i32_1 = arith.constant 0 : i32
    return %c0_i32, %c0_i32_0 : i32, i32
  }
  func.func @transform_3(%arg0: i32) -> (i32, i32) {
    %c0_i32 = arith.constant 0 : i32
    %c0_i32_0 = arith.constant 0 : i32
    %c0_i32_1 = arith.constant 0 : i32
    return %c0_i32, %c0_i32_0 : i32, i32
  }
  func.func @transform_4(%arg0: i32) -> (i32, i32) {
    %c0_i32 = arith.constant 0 : i32
    %c0_i32_0 = arith.constant 0 : i32
    %c0_i32_1 = arith.constant 0 : i32
    return %c0_i32, %c0_i32_0 : i32, i32
  }
  func.func @transform_5(%arg0: i32) -> (i32, i32) {
    %c0_i32 = arith.constant 0 : i32
    %c0_i32_0 = arith.constant 0 : i32
    %c0_i32_1 = arith.constant 0 : i32
    return %c0_i32, %c0_i32_0 : i32, i32
  }
  func.func @transform_6(%arg0: i32) -> (i32, i32) {
    %c0_i32 = arith.constant 0 : i32
    %c0_i32_0 = arith.constant 0 : i32
    %c0_i32_1 = arith.constant 0 : i32
    return %c0_i32, %c0_i32_0 : i32, i32
  }
  func.func @transform_7(%arg0: i32) -> (i32, i32) {
    %c0_i32 = arith.constant 0 : i32
    %c0_i32_0 = arith.constant 0 : i32
    return %arg0, %c0_i32 : i32, i32
  }
}

</mosaic_0001>

<bundles_post_ra>
// kernel: value_forward.1
= control target key start
LH: loop header
LB: loop body
LE: loop exit
PB: predicated region body
PF: predicated region fallthrough
CT: control target
= control target key end

     0   :  { %s1203_s0 = inlined_call_operand.hbm [shape: f32[16,11], index: 0, kind: input, shape index: {}]   ;;  %s1204_s1 = inlined_call_operand.hbm [shape: f32[11,256], index: 1, kind: input, shape index: {}]   ;;  %s1205_s2 = inlined_call_operand.vmem [shape: f32[1,256], index: 2, kind: input, shape index: {}]   ;;  %s1206_s3 = inlined_call_operand.hbm [shape: f32[256,256], index: 3, kind: input, shape index: {}]   ;;  %s1207_s4 = inlined_call_operand.vmem [shape: f32[1,256], index: 4, kind: input, shape index: {}]   ;;  %s1208_s5 = inlined_call_operand.vmem [shape: f32[1,256], index: 5, kind: input, shape index: {}]   ;;  %s1209_s6 = inlined_call_operand.<no memory space> [shape: f32[1,1], index: 6, kind: input, shape index: {}]   ;;  %s1210_s7 = inlined_call_operand.vmem [shape: f32[16,1], index: 7, kind: output, shape index: {}]  }
   0x1   :  { %v12_v0 = vstv %s1209_s6 }
   0x2   :  { %13 = vst [vmem:[#allocation2] sm:$0x1] %v12_v0 }
   0x3   :  { %14 = vsyncpa [#allocation4], 0 }
   0x4   :  { %16 = vsyncpa [#allocation4 + $0x1], 0 }
   0x5   :  { %17 = vsyncpa [#allocation6], 0  ;;  %s1014_s26 = smov 0   ;;  %s1016_s27 = smov 0  }
   0x6   :  { %s1018_s28 = smov 0   ;;  %s1020_s29 = smov 0  }
   0x7 LB: > { %s1033_s6 = sadd.s32 4294967295, %s962_s29   ;;  %p43_p0 = scmp.ne.s32.totalorder %s954_s27, %s950_s26  ;;  %s962_s29 = sphi %s1020_s29, %s1227_s29   ;;  %s958_s28 = sphi %s1018_s28, %s1226_s28   ;;  %s954_s27 = sphi %s1016_s27, %s1225_s27   ;;  %s950_s26 = sphi %s1014_s26, %s1224_s26  }
   0x8   : > { %p1211_p1 = scmp.eq.s32.totalorder %s1033_s6, 0  ;;  %p687_p2 = scmp.ge.s32.totalorder %s962_s29, 1 }
   0x9   : > { %p206_p3 = scmp.lt.s32.totalorder %s962_s29, 3  ;;  %s964_s9 = smov [#allocation5]  }
   0xa   : > { %p1041_p4 = por %p1211_p1, %p43_p0  ;;  %s218_s10 = sshll.u32 %s964_s9, 4  ;;  %s219_s10 = int_to_ptr.vmem [resolvable:$true] %s218_s10 }
   0xb   : > { %p1045_p5 = pnand %p687_p2, %p206_p3  ;;  %s965_s12 = smov [#allocation7]  }
   0xc   : > { %s1214_s30 = scalar_select %p1041_p4, 1, 0 }
   0xd   : > { %s1215_s8 = scalar_select %p1045_p5, 1, 0 }
   0xe   : > { %p784_p6 = pneg %p1045_p5  ;;  %s234_s13 = sshll.u32 %s965_s12, 4  ;;  %s1057_s13 = int_to_ptr.vmem [resolvable:$true] %s234_s13 }
   0xf   : > { %s838_s16 = scalar_lea.hbm %s1204_s1, 512 }
  0x10   : > { %p1053_p7 = pnand %p784_p6, %p1211_p1  ;;  %p839_p8 = scmp.ne.s32.totalorder %s1204_s1, %s838_s16 }
  0x11   : > { %p845_p12 = scmp.lt.u32.totalorder %s838_s16, %s1204_s1 }
  0x12   : > { %p840_p9 = pneg %p1053_p7 }
  0x14   : > { %p841_p10 = pnand %p840_p9, %p839_p8 }
  0x16   : > { %p842_p11 = pneg %p841_p10 }
  0x18   : > { %p847_p13 = pnand %p845_p12, %p842_p11 }
  0x1a   : > { %850 = shalt.err (!%p847_p13)
}
  0x1b   : > { %s851_s21 = scalar_lea.vmem %s219_s10, 512  ;;  %p859_p6 = scmp.lt.s32.totalorder %s219_s10, %s219_s10 }
  0x1c   : > { %p852_p0 = scmp.ne.s32.totalorder %s219_s10, %s851_s21  ;;  %p860_p1 = scmp.lt.s32.totalorder %s851_s21, %s851_s21 }
  0x1e   : > { %p854_p2 = pnand %p852_p0, %p840_p9  ;;  %p861_p4 = por %p860_p1, %p859_p6 }
  0x20   : > { %p855_p3 = pneg %p854_p2 }
  0x22   : > { %p862_p5 = pnand %p861_p4, %p855_p3 }
  0x24   : > { %865 = shalt.err (!%p862_p5)
}
  0x25   : > { %s966_s22 = smov 256   ;;  %s967_s23 = smov 16  }
  0x26   : > { %787 = dma.hbm_to_vmem [thread:$0]  (!%p1053_p7), %s1204_s1, 512, %s219_s10, [#allocation6], %s966_s22, %s966_s22, %s967_s23  }
  0x27   : > { %s866_s12 = scalar_lea.hbm %s1206_s3, 8192 }
  0x28   : > { %p867_p8 = scmp.ne.s32.totalorder %s1206_s3, %s866_s12  ;;  %p873_p5 = scmp.lt.u32.totalorder %s866_s12, %s1206_s3 }
  0x2a   : > { %p869_p1 = pnand %p867_p8, %p840_p9 }
  0x2c   : > { %p870_p4 = pneg %p869_p1 }
  0x2e   : > { %p875_p10 = pnand %p873_p5, %p870_p4 }
  0x30   : > { %878 = shalt.err (!%p875_p10)
}
  0x31   : > { %s879_s10 = scalar_lea.vmem %s1057_s13, 8192  ;;  %p887_p0 = scmp.lt.s32.totalorder %s1057_s13, %s1057_s13 }
  0x32   : > { %p880_p11 = scmp.ne.s32.totalorder %s1057_s13, %s879_s10  ;;  %p888_p2 = scmp.lt.s32.totalorder %s879_s10, %s879_s10 }
  0x34   : > { %p882_p12 = pnand %p880_p11, %p840_p9  ;;  %p889_p3 = por %p888_p2, %p887_p0 }
  0x36   : > { %p883_p13 = pneg %p882_p12 }
  0x38   : > { %p890_p6 = pnand %p889_p3, %p883_p13 }
  0x3a   : > { %893 = shalt.err (!%p890_p6)
}
  0x3b   : > { %790 = dma.hbm_to_vmem [thread:$0]  (!%p1053_p7), %s1206_s3, 8192, %s1057_s13, [#allocation6], %s966_s22, %s966_s22, %s967_s23  }
  0x3c   : > { %s1107_s20 = sadd.s32 1, %s962_s29   ;;  %s30_s21 = sadd.s32 1, %s958_s28 }
  0x3d   : > { %s27_s11 = ssub.s32 %s962_s29, %s1107_s20  ;;  %p37_p9 = scmp.ne.s32.totalorder %s958_s28, %s954_s27 }
  0x3e   : > { %p28_p8 = scmp.eq.s32.totalorder %s27_s11, 0  ;;  %p38_p1 = scmp.eq.s32.totalorder %s962_s29, 0 }
  0x3f   : > { %p797_p4 = scmp.lt.s32.totalorder %s962_s29, 2  ;;  %s257_s24 = sand.u32 1, %s958_s28  }
  0x40   : > { %s1118_s25 = scalar_select %p28_p8, %s958_s28, %s30_s21  }
  0x41   : > { %p39_p5 = por %p38_p1, %p37_p9  ;;  %s691_s26 = sshll.u32 %s257_s24, 3 }
  0x42   : > { %s692_s9 = sshll.u32 %s962_s29, 7  ;;  %s261_s13 = scalar_lea.vmem [#allocation3], %s691_s26 }
  0x43   : > { %s1124_s15 = scalar_lea.hbm %s1203_s0, %s692_s9  ;;  %s268_s22 = sshll.u32 %s261_s13, 4  ;;  %s1130_s22 = int_to_ptr.vmem [resolvable:$true] %s268_s22 }
  0x44   : > { %p1126_p7 = pnand %p797_p4, %p39_p5  ;;  %s258_s29 = scalar_lea.sflag [#allocation4], %s257_s24 }
  0x45   : > { %s894_s16 = scalar_lea.hbm %s1124_s15, 128  ;;  %s899_s18 = scalar_lea.hbm %s1203_s0, 256 }
  0x46   : > { %p895_p10 = scmp.ne.s32.totalorder %s1124_s15, %s894_s16  ;;  %p896_p11 = pneg %p1126_p7 }
  0x47   : > { %p900_p0 = scmp.lt.u32.totalorder %s1124_s15, %s1203_s0  ;;  %p901_p2 = scmp.lt.u32.totalorder %s899_s18, %s894_s16 }
  0x48   : > { %p897_p12 = pnand %p896_p11, %p895_p10  ;;  %p903_p6 = scmp.lt.u32.totalorder %s894_s16, %s1124_s15 }
  0x49   : > { %p902_p3 = por %p901_p2, %p900_p0 }
  0x4a   : > { %p898_p13 = pneg %p897_p12 }
  0x4b   : > { %p904_p9 = por %p903_p6, %p902_p3 }
  0x4d   : > { %p905_p8 = pnand %p904_p9, %p898_p13 }
  0x4f   : > { %908 = shalt.err (!%p905_p8)
}
  0x50   : > { %s909_s11 = scalar_lea.vmem %s1130_s22, 128  ;;  %s968_s24 = smov [#allocation3]  }
  0x51   : > { %p910_p1 = scmp.ne.s32.totalorder %s1130_s22, %s909_s11  ;;  %s914_s26 = sshll.u32 %s968_s24, 4  ;;  %s915_s26 = int_to_ptr.vmem [resolvable:$false] %s914_s26 }
  0x52   : > { %s916_s9 = scalar_lea.vmem %s915_s26, 256  ;;  %p917_p10 = scmp.lt.s32.totalorder %s1130_s22, %s915_s26 }
  0x53   : > { %p912_p4 = pnand %p910_p1, %p896_p11  ;;  %p918_p12 = scmp.lt.s32.totalorder %s916_s9, %s909_s11 }
  0x55   : > { %p913_p5 = pneg %p912_p4  ;;  %p919_p0 = por %p918_p12, %p917_p10 }
  0x57   : > { %p920_p2 = pnand %p919_p0, %p913_p5 }
  0x59   : > { %923 = shalt.err (!%p920_p2)
}
  0x5a   : > { %794 = dma.hbm_to_vmem [thread:$0]  (!%p1126_p7), %s1124_s15, 128, %s1130_s22, %s258_s29  }
  0x5b   : > { %p1218_p13 = scmp.ne.s32.totalorder %s1215_s8, 0 }
  0x5c   : > { %s279_s12 = sand.u32 (!%p1218_p13), 1, %s954_s27   ;;  %p1219_p11 = scmp.ne.s32.totalorder (!%p1218_p13), %s1214_s30, 0 }
  0x5d   : > { %277 = sbr.rel (%p1218_p13) target bundleno = 695 (0x2b7), region = 48  ;;  %s694_s14 = sshll.u32 (!%p1218_p13), %s279_s12, 3 }
  0x5e   : > { %s280_s13 = scalar_lea.sflag (!%p1218_p13), [#allocation4], %s279_s12  ;;  %s283_s16 = scalar_lea.vmem (!%p1218_p13), [#allocation3], %s694_s14 }
  0x64   : > { %941 = dma.done.wait (%p1219_p11), %s280_s13, 128  }
  0x65   : > { %943 = vsyncadd (%p1219_p11), %s280_s13, 4294967168  ;;  %p1220_p3 = scmp.eq.s32.totalorder %s1033_s6, 0 }
  0x67   : > { %945 = dma.done.wait (%p1220_p3), [#allocation6], 8704   ;;  %p1221_p6 = pmov %p1220_p3 }
  0x68   : > { %v969_v1 = vmov 0.0   ;;  %vm346_vm0 = vcmask 1042432   ;;  %vm970_vm1 = vmmov 1   ;;  %v327_v3 = vld [vmem:[#allocation5 + $0x8] sm:$0xff]  ;;  %v329_v4 = vld [vmem:[#allocation5 + $0x18] sm:$0x7] }
  0x69   : > { %947 = vsyncadd (%p1221_p6), [#allocation6], 4294958592  ;;  %417 = vmatprep.mubr.f32.mxu0 %v969_v1  ;;  %v326_v5 = vld [vmem:[#allocation5] sm:$0xff]  ;;  %v704_v6 = vpack.c.bf16 %v329_v4, %v327_v3  ;;  %v328_v7 = vld [vmem:[#allocation5 + $0x10] sm:$0x7]  ;;  %vm342_vm3 = vcmask 89088  }
  0x6a   : > { %vm1168_vm2 = vmpackc.low %vm346_vm0, %vm970_vm1  ;;  %v427_v8 = vld [vmem:[#allocation7 + $0x8] sm:$0xff]  ;;  %v707_v9 = vpack.c.bf16 %v328_v7, %v326_v5  ;;  %v325_v10 = vld [vmem:[%s283_s16] sm:$0xff]  ;;  %p321_p7 = scmp.lt.s32.totalorder %s1033_s6, 1  ;;  %vm600_vm4 = vcmask 7168  }
  0x6b   : > { %v429_v11 = vld [vmem:[#allocation7 + $0x18] sm:$0xff]  ;;  %v426_v12 = vld [vmem:[#allocation7] sm:$0xff]  ;;  %v428_v13 = vld [vmem:[#allocation7 + $0x10] sm:$0xff]  ;;  %706 = vmatprep.subr.msk.bf16.mxu0 %vm1168_vm2, %v704_v6 }
  0x6c   : > { %v710_v14 = vpack.c.bf16 %v429_v11, %v427_v8  ;;  %v712_v15 = vpack.c.bf16 %v428_v13, %v426_v12  ;;  %v431_v16 = vld [vmem:[#allocation7 + $0x28] sm:$0xff]  ;;  %v433_v17 = vld [vmem:[#allocation7 + $0x38] sm:$0xff]  ;;  %v430_v18 = vld [vmem:[#allocation7 + $0x20] sm:$0xff]  ;;  %709 = vmatpush1.bf16.msk.msra.mxu0 %vm1168_vm2, %v707_v9  ;;  %s1229_s6 = smov (!%p321_p7, %s1033_s6), 1 }
  0x6d   : > { %v714_v19 = vpack.c.bf16 %v433_v17, %v431_v16  ;;  %v432_v20 = vld [vmem:[#allocation7 + $0x30] sm:$0xff]  ;;  %v435_v21 = vld [vmem:[#allocation7 + $0x48] sm:$0xff]  ;;  %v437_v22 = vld [vmem:[#allocation7 + $0x58] sm:$0xff]  ;;  %s697_s17 = sshll.u32 %s1229_s6, 3 }
  0x6e   : > { %711 = vmatprep.subr.bf16.mxu1 %v710_v14  ;;  %v716_v23 = vpack.c.bf16 %v432_v20, %v430_v18  ;;  %v718_v24 = vpack.c.bf16 %v437_v22, %v435_v21  ;;  %v434_v25 = vld [vmem:[#allocation7 + $0x40] sm:$0xff]  ;;  %v436_v26 = vld [vmem:[#allocation7 + $0x50] sm:$0xff]  ;;  %v439_v27 = vld [vmem:[#allocation7 + $0x68] sm:$0xff]  ;;  %s324_s19 = scalar_lea.vmem %s1210_s7, %s697_s17 }
  0x6f   : > { %713 = vmatpush1.bf16.msra.mxu1 %v712_v15  ;;  %700 = vmatmul.mubr.msk.f32.vlgmr.msra.gmra.mrb[0].mxu0 %vm342_vm3, %v325_v10  ;;  %v441_v28 = vld [vmem:[#allocation7 + $0x78] sm:$0xff]  ;;  %v720_v29 = vpack.c.bf16 %v436_v26, %v434_v25  ;;  %v438_v31 = vld [vmem:[#allocation7 + $0x60] sm:$0xff]  ;;  %v440_v32 = vld [vmem:[#allocation7 + $0x70] sm:$0xff] }
  0x70   : > { %715 = vmatprep.subr.bf16.mxu1 %v714_v19  ;;  %v722_v30 = vpack.c.bf16 %v441_v28, %v439_v27  ;;  %v443_v33 = vld [vmem:[#allocation7 + $0x88] sm:$0xff]  ;;  %v445_v34 = vld [vmem:[#allocation7 + $0x98] sm:$0xff]  ;;  %v724_v35 = vpack.c.bf16 %v440_v32, %v438_v31  ;;  %v442_v37 = vld [vmem:[#allocation7 + $0x80] sm:$0xff] }
  0x71   : > { %v726_v36 = vpack.c.bf16 %v445_v34, %v443_v33  ;;  %v444_v38 = vld [vmem:[#allocation7 + $0x90] sm:$0xff]  ;;  %v447_v39 = vld [vmem:[#allocation7 + $0xa8] sm:$0xff]  ;;  %v449_v40 = vld [vmem:[#allocation7 + $0xb8] sm:$0xff] }
  0x72   : > { %v728_v41 = vpack.c.bf16 %v444_v38, %v442_v37  ;;  %v730_v42 = vpack.c.bf16 %v449_v40, %v447_v39  ;;  %v446_v43 = vld [vmem:[#allocation7 + $0xa0] sm:$0xff]  ;;  %v448_v44 = vld [vmem:[#allocation7 + $0xb0] sm:$0xff]  ;;  %v451_v45 = vld [vmem:[#allocation7 + $0xc8] sm:$0xff] }
  0x73   : > { %717 = vmatpush1.bf16.msra.mxu1 %v716_v23  ;;  %v453_v46 = vld [vmem:[#allocation7 + $0xd8] sm:$0xff]  ;;  %v732_v47 = vpack.c.bf16 %v448_v44, %v446_v43  ;;  %v450_v49 = vld [vmem:[#allocation7 + $0xc0] sm:$0xff]  ;;  %v452_v50 = vld [vmem:[#allocation7 + $0xd0] sm:$0xff] }
  0x74   : > { %719 = vmatprep.subr.bf16.mxu1 %v718_v24  ;;  %v734_v48 = vpack.c.bf16 %v453_v46, %v451_v45  ;;  %v455_v51 = vld [vmem:[#allocation7 + $0xe8] sm:$0xff]  ;;  %v457_v52 = vld [vmem:[#allocation7 + $0xf8] sm:$0xff]  ;;  %v736_v53 = vpack.c.bf16 %v452_v50, %v450_v49  ;;  %v454_v55 = vld [vmem:[#allocation7 + $0xe0] sm:$0xff] }
  0x75   : > { %v738_v54 = vpack.c.bf16 %v457_v52, %v455_v51  ;;  %v456_v56 = vld [vmem:[#allocation7 + $0xf0] sm:$0xff]  ;;  %v459_v57 = vld [vmem:[#allocation7 + $0x108] sm:$0xff]  ;;  %v461_v58 = vld [vmem:[#allocation7 + $0x118] sm:$0xff] }
  0x76   : > { %v740_v59 = vpack.c.bf16 %v456_v56, %v454_v55  ;;  %v742_v60 = vpack.c.bf16 %v461_v58, %v459_v57  ;;  %v458_v61 = vld [vmem:[#allocation7 + $0x100] sm:$0xff]  ;;  %v460_v62 = vld [vmem:[#allocation7 + $0x110] sm:$0xff]  ;;  %v463_v63 = vld [vmem:[#allocation7 + $0x128] sm:$0xff] }
  0x77   : > { %721 = vmatpush1.bf16.msra.mxu1 %v720_v29  ;;  %v465_v0 = vld [vmem:[#allocation7 + $0x138] sm:$0xff]  ;;  %v744_v1 = vpack.c.bf16 %v460_v62, %v458_v61  ;;  %v462_v3 = vld [vmem:[#allocation7 + $0x120] sm:$0xff]  ;;  %v464_v4 = vld [vmem:[#allocation7 + $0x130] sm:$0xff] }
  0x78   : > { %723 = vmatprep.subr.bf16.mxu1 %v722_v30  ;;  %v746_v2 = vpack.c.bf16 %v465_v0, %v463_v63  ;;  %v467_v5 = vld [vmem:[#allocation7 + $0x148] sm:$0xff]  ;;  %v469_v6 = vld [vmem:[#allocation7 + $0x158] sm:$0xff]  ;;  %v748_v7 = vpack.c.bf16 %v464_v4, %v462_v3  ;;  %v466_v9 = vld [vmem:[#allocation7 + $0x140] sm:$0xff] }
  0x79   : > { %v750_v8 = vpack.c.bf16 %v469_v6, %v467_v5  ;;  %v468_v10 = vld [vmem:[#allocation7 + $0x150] sm:$0xff]  ;;  %v471_v11 = vld [vmem:[#allocation7 + $0x168] sm:$0xff]  ;;  %v473_v12 = vld [vmem:[#allocation7 + $0x178] sm:$0xff] }
  0x7a   : > { %v752_v13 = vpack.c.bf16 %v468_v10, %v466_v9  ;;  %v754_v14 = vpack.c.bf16 %v473_v12, %v471_v11  ;;  %v470_v15 = vld [vmem:[#allocation7 + $0x160] sm:$0xff]  ;;  %v472_v16 = vld [vmem:[#allocation7 + $0x170] sm:$0xff]  ;;  %v475_v17 = vld [vmem:[#allocation7 + $0x188] sm:$0xff] }
  0x7b   : > { %725 = vmatpush1.bf16.msra.mxu1 %v724_v35  ;;  %v477_v18 = vld [vmem:[#allocation7 + $0x198] sm:$0xff]  ;;  %v756_v19 = vpack.c.bf16 %v472_v16, %v470_v15  ;;  %v474_v21 = vld [vmem:[#allocation7 + $0x180] sm:$0xff]  ;;  %v476_v22 = vld [vmem:[#allocation7 + $0x190] sm:$0xff] }
  0x7c   : > { %727 = vmatprep.subr.bf16.mxu1 %v726_v36  ;;  %v758_v20 = vpack.c.bf16 %v477_v18, %v475_v17  ;;  %v479_v23 = vld [vmem:[#allocation7 + $0x1a8] sm:$0xff]  ;;  %v481_v24 = vld [vmem:[#allocation7 + $0x1b8] sm:$0xff]  ;;  %v760_v25 = vpack.c.bf16 %v476_v22, %v474_v21  ;;  %v478_v27 = vld [vmem:[#allocation7 + $0x1a0] sm:$0xff] }
  0x7d   : > { %v762_v26 = vpack.c.bf16 %v481_v24, %v479_v23  ;;  %v480_v28 = vld [vmem:[#allocation7 + $0x1b0] sm:$0xff]  ;;  %v483_v29 = vld [vmem:[#allocation7 + $0x1c8] sm:$0xff]  ;;  %v485_v30 = vld [vmem:[#allocation7 + $0x1d8] sm:$0xff] }
  0x7e   : > { %v764_v31 = vpack.c.bf16 %v480_v28, %v478_v27  ;;  %v766_v32 = vpack.c.bf16 %v485_v30, %v483_v29  ;;  %v482_v33 = vld [vmem:[#allocation7 + $0x1c0] sm:$0xff]  ;;  %v484_v34 = vld [vmem:[#allocation7 + $0x1d0] sm:$0xff]  ;;  %v487_v36 = vld [vmem:[#allocation7 + $0x1e8] sm:$0xff] }
  0x7f   : > { %729 = vmatpush1.bf16.msra.mxu1 %v728_v41  ;;  %v768_v35 = vpack.c.bf16 %v484_v34, %v482_v33  ;;  %v489_v37 = vld [vmem:[#allocation7 + $0x1f8] sm:$0xff]  ;;  %v486_v39 = vld [vmem:[#allocation7 + $0x1e0] sm:$0xff]  ;;  %v488_v40 = vld [vmem:[#allocation7 + $0x1f0] sm:$0xff] }
  0x80   : > { %731 = vmatprep.subr.bf16.mxu1 %v730_v42  ;;  %v770_v38 = vpack.c.bf16 %v489_v37, %v487_v36  ;;  %v772_v41 = vpack.c.bf16 %v488_v40, %v486_v39  ;;  %v332_v42 = vlaneseq  ;;  %v330_v45 = vld [vmem:[%s1205_s2] sm:$0x3] }
  0x81   : > { %v490_v55 = vld [vmem:[%s1207_s4] sm:$0x3] }
  0x82   : > { %v333_v43 = vshrl.u32 %v332_v42, 7  ;;  %v575_v58 = vld [vmem:[%s1208_s5] sm:$0x3] }
  0x83   : > { %733 = vmatpush1.bf16.msra.mxu1 %v732_v47  ;;  %v701_v6 = vld [vmem:[#allocation2] ss:$0 sm:$0xff] }
  0x84   : > { %735 = vmatprep.subr.bf16.mxu1 %v734_v48  ;;  %v334_v44 = vsub.s32 0, %v333_v43  ;;  %v338_v46 = vsub.s32 1, %v333_v43 }
  0x86   : > { %v335_v47 = vrot.slane %v330_v45, %v334_v44  ;;  %v339_v48 = vrot.slane %v330_v45, %v338_v46  ;;  %v495_v56 = vrot.slane %v490_v55, %v334_v44  ;;  %v499_v57 = vrot.slane %v490_v55, %v338_v46 }
  0x87   : > { %737 = vmatpush1.bf16.msra.mxu1 %v736_v53  ;;  %v580_v62 = vrot.slane %v575_v58, %v334_v44  ;;  %v584_v0 = vrot.slane %v575_v58, %v338_v46 }
  0x88   : > { %739 = vmatprep.subr.bf16.mxu1 %v738_v54 }
  0x8b   : > { %741 = vmatpush1.bf16.msra.mxu1 %v740_v59 }
  0x8c   : > { %743 = vmatprep.subr.bf16.mxu1 %v742_v60 }
  0x8f   : > { %745 = vmatpush1.bf16.msra.mxu1 %v744_v1 }
  0x90   : > { %747 = vmatprep.subr.bf16.mxu1 %v746_v2 }
  0x93   : > { %749 = vmatpush1.bf16.msra.mxu1 %v748_v7 }
  0x94   : > { %751 = vmatprep.subr.bf16.mxu1 %v750_v8 }
  0x97   : > { %753 = vmatpush1.bf16.msra.mxu1 %v752_v13 }
  0x98   : > { %755 = vmatprep.subr.bf16.mxu1 %v754_v14 }
  0x9b   : > { %757 = vmatpush1.bf16.msra.mxu1 %v756_v19 }
  0x9c   : > { %759 = vmatprep.subr.bf16.mxu1 %v758_v20 }
  0x9f   : > { %761 = vmatpush1.bf16.msra.mxu1 %v760_v25 }
  0xa0   : > { %763 = vmatprep.subr.bf16.mxu1 %v762_v26 }
  0xa3   : > { %765 = vmatpush1.bf16.msra.mxu1 %v764_v31 }
  0xa4   : > { %767 = vmatprep.subr.bf16.mxu1 %v766_v32 }
  0xa7   : > { %769 = vmatpush1.bf16.msra.mxu1 %v768_v35 }
  0xa8   : > { %771 = vmatprep.subr.bf16.mxu1 %v770_v38 }
  0xab   : > { %773 = vmatpush1.bf16.msra.mxu1 %v772_v41 }
 0x142   : > { %v419_v49 = vpop.f32.mrb[0].mxu0 }
 0x143   : > { %v420_v50 = vadd.f32 %v419_v49, %v335_v47  ;;  %v421_v51 = vpop.f32.mrb[1].mxu0 }
 0x144   : > { %v422_v52 = vadd.f32 %v421_v51, %v339_v48 }
 0x145   : > { %v424_v54 = vmax.f32 %v420_v50, 0.0 }
 0x146   : > { %v425_v53 = vmax.f32 %v422_v52, 0.0 }
 0x148   : > { %566 = vmatprep.mubr.f32.mxu1 %v425_v53 }
 0x149   : > { %567 = vmatmul.mubr.f32.vlgmr.msra.gmra.mrb[0].mxu1 %v424_v54 }
 0x21c   : > { %v568_v59 = vpop.f32.mrb[0].mxu1 }
 0x21d   : > { %v569_v60 = vadd.f32 %v568_v59, %v495_v56  ;;  %v570_v61 = vpop.f32.mrb[1].mxu1 }
 0x21e   : > { %v571_v63 = vadd.f32 %v570_v61, %v499_v57 }
 0x21f   : > { %v573_v1 = vmax.f32 %v569_v60, 0.0 }
 0x220   : > { %v574_v2 = vmax.f32 %v571_v63, 0.0 }
 0x221   : > { %v587_v3 = vmul.f32 %v580_v62, %v573_v1 }
 0x222   : > { %v588_v4 = vmul.f32 %v584_v0, %v574_v2 }
 0x224   : > { %v589_v5 = vadd.f32 %v588_v4, %v587_v3 }
 0x226   : > { %590 = vadd.xlane.f32.xlu0 %v589_v5 }
 0x2b3   : > { %v591_v7 = vpop.xlane.xlu0 %590 }
 0x2b4   : > { %v599_v8 = vadd.f32 %v701_v6, %v591_v7 }
 0x2b6   : > { %601 = vst.msk [vmem:[%s324_s19] sm:$0xff] %vm600_vm4, %v599_v8 }
 0x2b7 PF: > { %p20_p9 = scmp.ge.s32.totalorder %s1107_s20, 4   ;;  %s1224_s26 = smov %s954_s27 }
 0x2b8   : > { %s1225_s27 = smov %s958_s28  ;;  %s1226_s28 = smov %s1118_s25 }
 0x2b9   : > { %s1227_s29 = smov %s1107_s20  ;;  %22 = sbr.rel (!%p20_p9) target bundleno = 7 (0x7), region = 96 }
 0x2c0   :  { %621 = vsyncpa [#allocation4], 1 }
 0x2c1   :  { %623 = vsyncpa [#allocation4 + $0x1], 1 }
 0x2c2   :  { %624 = vsyncpa [#allocation6], 1 }

</bundles_post_ra>
